<compile_context>
chip_gen: v7x
topology: tpu7x:2x2x1
jax: 0.10.0
libtpu: 0.0.40
codegen_flags: <defaults>
</compile_context>

<pallas_src>
import functools

import jax
import jax.numpy as jnp
from jax import lax
from jax.experimental import pallas as pl
from jax.experimental.pallas import tpu as pltpu

EPS = 0.1  # label smoothing used in the reference forward()


def pair_match_kernel(x_ref, y_ref, w_ref, b_ref, out_ref,
                      xs_sc, m_sc, l_sc, s_sc, d_sc, *, batch):
    """Row-tiled scorer-linear + online-softmax smoothed NLL + accuracy."""
    i = pl.program_id(0)              # query-row tile
    j = pl.program_id(1)              # key-col tile (reduction axis)
    nj = pl.num_programs(1)

    @pl.when(j == 0)
    def _init():
        # scorer(x) = x @ W^T + b, computed once per row tile (bf16 MXU, f32 acc).
        xs = lax.dot_general(
            x_ref[...].astype(jnp.bfloat16),
            w_ref[...].astype(jnp.bfloat16),
            dimension_numbers=(((1,), (1,)), ((), ())),   # contract last axes (no .T)
            preferred_element_type=jnp.float32,
        ) + b_ref[...]
        xs_sc[...] = xs
        m_sc[...] = jnp.full_like(m_sc, -jnp.inf)
        l_sc[...] = jnp.zeros_like(l_sc)
        s_sc[...] = jnp.zeros_like(s_sc)
        d_sc[...] = jnp.zeros_like(d_sc)

    # scores block = scorer(x_tile) @ y_tile^T   (bf16 MXU, f32 acc)
    scores = lax.dot_general(
        xs_sc[...].astype(jnp.bfloat16),
        y_ref[...].astype(jnp.bfloat16),
        dimension_numbers=(((1,), (1,)), ((), ())),
        preferred_element_type=jnp.float32,
    )                                                   # (TQ, TK) f32
    tq, tk = scores.shape

    row_g = i * tq + lax.broadcasted_iota(jnp.int32, (tq, tk), 0)
    col_g = j * tk + lax.broadcasted_iota(jnp.int32, (tq, tk), 1)
    diag = row_g == col_g

    # Running raw-score sum and diagonal (gold) score.
    s_sc[...] += jnp.sum(scores, axis=-1, keepdims=True)
    d_sc[...] += jnp.sum(jnp.where(diag, scores, 0.0), axis=-1, keepdims=True)

    # Online log-sum-exp (flash-style running max / running sum).
    m_prev = m_sc[...]
    m_new = jnp.maximum(m_prev, jnp.max(scores, axis=-1, keepdims=True))
    l_sc[...] = l_sc[...] * jnp.exp(m_prev - m_new) + jnp.sum(
        jnp.exp(scores - m_new), axis=-1, keepdims=True)
    m_sc[...] = m_new

    @pl.when(j == nj - 1)
    def _finalize():
        lse = m_sc[...] + jnp.log(l_sc[...])            # (TQ, 1)
        diag_lp = d_sc[...] - lse                       # log_probs[i, i]
        sum_lp = s_sc[...] - batch * lse                # sum_j log_probs[i, j]
        loss_row = -(1.0 - EPS) * diag_lp - (EPS / batch) * sum_lp
        # correct iff the diagonal score is the row max (fp-tie caveat; measure zero)
        correct = (d_sc[...] == m_sc[...]).astype(jnp.float32)
        out_ref[:, 0:1] = loss_row
        out_ref[:, 1:2] = correct


def _pick_tile(b):
    for t in (512, 256, 128, 64, 32, 16, 8):
        if b % t == 0:
            return t
    return b


def _vmem_limit_bytes(tq, tk, d):
    f32 = 4
    dbl = 2  # double buffering of pipelined operands
    operands = (tq * d + tk * d + d * d + d + tq * 2) * f32 * dbl
    scratch = (tq * d + 4 * tq) * f32
    est = int(1.5 * (operands + scratch)) + (1 << 20)
    return min(max(est, 16 * 1024 * 1024), 64 * 1024 * 1024)


def pair_match_loss(x, y, w, b):
    """x, y: (bsz, embed_dim); w: (embed_dim, embed_dim) torch layout [out,in]; b: (embed_dim,)."""
    B, D = x.shape
    TQ = _pick_tile(B)
    TK = _pick_tile(B)
    ni, nj = B // TQ, B // TK

    kernel = functools.partial(pair_match_kernel, batch=B)

    out = pl.pallas_call(
        kernel,
        out_shape=jax.ShapeDtypeStruct((B, 2), jnp.float32),
        grid_spec=pltpu.PrefetchScalarGridSpec(
            num_scalar_prefetch=0,
            grid=(ni, nj),
            in_specs=[
                pl.BlockSpec((TQ, D), lambda i, j: (i, 0)),   # x row tile
                pl.BlockSpec((TK, D), lambda i, j: (j, 0)),   # y col tile
                pl.BlockSpec((D, D), lambda i, j: (0, 0)),    # scorer weight (resident)
                pl.BlockSpec((1, D), lambda i, j: (0, 0)),    # scorer bias
            ],
            out_specs=pl.BlockSpec((TQ, 2), lambda i, j: (i, 0)),
            scratch_shapes=[
                pltpu.VMEM((TQ, D), jnp.float32),   # xs (scorer(x) for row tile)
                pltpu.VMEM((TQ, 1), jnp.float32),   # running max m
                pltpu.VMEM((TQ, 1), jnp.float32),   # running sum-exp l
                pltpu.VMEM((TQ, 1), jnp.float32),   # running raw-score sum
                pltpu.VMEM((TQ, 1), jnp.float32),   # diagonal (gold) score
            ],
        ),
        compiler_params=pltpu.CompilerParams(
            dimension_semantics=("parallel", "arbitrary"),
            vmem_limit_bytes=_vmem_limit_bytes(TQ, TK, D),
        ),
    )(x, y, w, b.reshape(1, D))

    loss = jnp.mean(out[:, 0])
    acc = jnp.mean(out[:, 1])
    return loss, acc


if __name__ == "__main__":
    key = jax.random.PRNGKey(0)
    k_src, k_tgt, k_emb, k_w = jax.random.split(key, 4)

    seq_len, bsz, embed_dim, vocab = 8, 8, 32, 100

    # src/tgt token ids: shape (seq_len, bsz) -- forward() takes bsz = src.size(1)
    src = jax.random.randint(k_src, (seq_len, bsz), 0, vocab)
    tgt = jax.random.randint(k_tgt, (seq_len, bsz), 0, vocab)

    # TODO(synk): bert_model.work(.)[1] (pooled BERT embedding) has no in-script
    # equivalent; replaced by a deterministic embedding-table + mean-pool stand-in.
    embed_tbl = jax.random.normal(k_emb, (vocab, embed_dim), jnp.float32)
    x = jnp.mean(embed_tbl[src], axis=0)   # (bsz, embed_dim)
    y = jnp.mean(embed_tbl[tgt], axis=0)   # (bsz, embed_dim)

    # scorer = nn.Linear(embed_dim, embed_dim); weight ~ N(0, 0.02), bias = 0
    w = 0.02 * jax.random.normal(k_w, (embed_dim, embed_dim), jnp.float32)
    b = jnp.zeros((embed_dim,), jnp.float32)

    loss, acc = jax.jit(pair_match_loss)(x, y, w, b)
    jax.block_until_ready((loss, acc))

    # pure-JAX reference check (mirrors the kernel's bf16 MXU operand precision,
    # f32 accumulation / softmax).
    xb, yb, wb = (x.astype(jnp.bfloat16), y.astype(jnp.bfloat16),
                  w.astype(jnp.bfloat16))
    xs_ref = jnp.dot(xb, wb.T, preferred_element_type=jnp.float32) + b
    scores_ref = jnp.dot(xs_ref.astype(jnp.bfloat16), yb.T,
                         preferred_element_type=jnp.float32)
    lp_ref = jax.nn.log_softmax(scores_ref, axis=-1)
    gold = jnp.arange(bsz)
    nll_ref = -lp_ref[gold, gold]
    smooth_ref = -lp_ref.sum(-1)
    loss_ref = ((1.0 - EPS) * nll_ref + (EPS / bsz) * smooth_ref).mean()
    acc_ref = jnp.mean((jnp.argmax(lp_ref, -1) == gold).astype(jnp.float32))

    assert jnp.allclose(loss, loss_ref, atol=1e-3, rtol=1e-3), (loss, loss_ref)
    assert jnp.allclose(acc, acc_ref, atol=1e-6), (acc, acc_ref)
    print("KERNEL_OK")
</pallas_src>

<mosaic_0001>
module attributes {stable_mosaic.version = 11 : i64} {
  func.func @pair_match_kernel(%arg0: i32, %arg1: i32, %arg2: memref<8x32xf32, #tpu.memory_space<vmem>>, %arg3: memref<8x32xf32, #tpu.memory_space<vmem>>, %arg4: memref<32x32xf32, #tpu.memory_space<vmem>>, %arg5: memref<1x32xf32, #tpu.memory_space<vmem>>, %arg6: memref<8x2xf32, #tpu.memory_space<vmem>>, %arg7: memref<8x32xf32, #tpu.memory_space<vmem>>, %arg8: memref<8x1xf32, #tpu.memory_space<vmem>>, %arg9: memref<8x1xf32, #tpu.memory_space<vmem>>, %arg10: memref<8x1xf32, #tpu.memory_space<vmem>>, %arg11: memref<8x1xf32, #tpu.memory_space<vmem>>) attributes {dimension_semantics = [#tpu.dimension_semantics<parallel>, #tpu.dimension_semantics<arbitrary>], iteration_bounds = array<i64: 1, 1>, scalar_prefetch = 0 : i64, scratch_operands = 5 : i64, tpu.core_type = #tpu.core_type<tc>, window_params = [{transform_indices = @transform_0, window_bounds = array<i64: 8, 32>}, {transform_indices = @transform_1, window_bounds = array<i64: 8, 32>}, {pipeline_mode = #tpu.pipeline_mode<synchronous>, transform_indices = @transform_2, window_bounds = array<i64: 32, 32>}, {pipeline_mode = #tpu.pipeline_mode<synchronous>, transform_indices = @transform_3, window_bounds = array<i64: 1, 32>}, {transform_indices = @transform_4, window_bounds = array<i64: 8, 2>}]} {
    %c0_i32 = arith.constant 0 : i32
    %0 = arith.cmpi eq, %arg1, %c0_i32 : i32
    %1 = arith.extui %0 : i1 to i32
    %c0_i32_0 = arith.constant 0 : i32
    %2 = arith.cmpi ne, %1, %c0_i32_0 : i32
    scf.if %2 {
      %c0_28 = arith.constant 0 : index
      %c0_29 = arith.constant 0 : index
      %48 = vector.load %arg2[%c0_28, %c0_29] : memref<8x32xf32, #tpu.memory_space<vmem>>, vector<8x32xf32>
      %49 = arith.truncf %48 : vector<8x32xf32> to vector<8x32xbf16>
      %c0_30 = arith.constant 0 : index
      %c0_31 = arith.constant 0 : index
      %50 = vector.load %arg4[%c0_30, %c0_31] : memref<32x32xf32, #tpu.memory_space<vmem>>, vector<32x32xf32>
      %51 = arith.truncf %50 : vector<32x32xf32> to vector<32x32xbf16>
      %cst_32 = arith.constant dense<0.000000e+00> : vector<8x32xf32>
      %52 = tpu.matmul %49, %51, %cst_32 {dimension_numbers = #tpu.dot_dimension_numbers<[1], [1], [0], [0], [0, 0, 1, 0], [], []>} : vector<8x32xbf16>, vector<32x32xbf16>, vector<8x32xf32> -> vector<8x32xf32>
      %c0_33 = arith.constant 0 : index
      %c0_34 = arith.constant 0 : index
      %53 = vector.load %arg5[%c0_33, %c0_34] : memref<1x32xf32, #tpu.memory_space<vmem>>, vector<1x32xf32>
      %54 = vector.broadcast %53 : vector<1x32xf32> to vector<8x32xf32>
      %55 = arith.addf %52, %54 : vector<8x32xf32>
      %c0_35 = arith.constant 0 : index
      %c0_36 = arith.constant 0 : index
      %56 = vector.load %arg7[%c0_35, %c0_36] : memref<8x32xf32, #tpu.memory_space<vmem>>, vector<8x32xf32>
      tpu.vector_store %arg7[%c0_35, %c0_36], %55 {strides = array<i32>} : memref<8x32xf32, #tpu.memory_space<vmem>>, vector<8x32xf32>,
      %cst_37 = arith.constant 0xFF800000 : f32
      %57 = vector.broadcast %cst_37 : f32 to vector<8x1xf32>
      %c0_38 = arith.constant 0 : index
      %c0_39 = arith.constant 0 : index
      %58 = vector.load %arg8[%c0_38, %c0_39] : memref<8x1xf32, #tpu.memory_space<vmem>>, vector<8x1xf32>
      tpu.vector_store %arg8[%c0_38, %c0_39], %57 {strides = array<i32>} : memref<8x1xf32, #tpu.memory_space<vmem>>, vector<8x1xf32>,
      %cst_40 = arith.constant 0.000000e+00 : f32
      %59 = vector.broadcast %cst_40 : f32 to vector<8x1xf32>
      %c0_41 = arith.constant 0 : index
      %c0_42 = arith.constant 0 : index
      %60 = vector.load %arg9[%c0_41, %c0_42] : memref<8x1xf32, #tpu.memory_space<vmem>>, vector<8x1xf32>
      tpu.vector_store %arg9[%c0_41, %c0_42], %59 {strides = array<i32>} : memref<8x1xf32, #tpu.memory_space<vmem>>, vector<8x1xf32>,
      %cst_43 = arith.constant 0.000000e+00 : f32
      %61 = vector.broadcast %cst_43 : f32 to vector<8x1xf32>
      %c0_44 = arith.constant 0 : index
      %c0_45 = arith.constant 0 : index
      %62 = vector.load %arg10[%c0_44, %c0_45] : memref<8x1xf32, #tpu.memory_space<vmem>>, vector<8x1xf32>
      tpu.vector_store %arg10[%c0_44, %c0_45], %61 {strides = array<i32>} : memref<8x1xf32, #tpu.memory_space<vmem>>, vector<8x1xf32>,
      %cst_46 = arith.constant 0.000000e+00 : f32
      %63 = vector.broadcast %cst_46 : f32 to vector<8x1xf32>
      %c0_47 = arith.constant 0 : index
      %c0_48 = arith.constant 0 : index
      %64 = vector.load %arg11[%c0_47, %c0_48] : memref<8x1xf32, #tpu.memory_space<vmem>>, vector<8x1xf32>
      tpu.vector_store %arg11[%c0_47, %c0_48], %63 {strides = array<i32>} : memref<8x1xf32, #tpu.memory_space<vmem>>, vector<8x1xf32>,
    } else {
    }
    %c0 = arith.constant 0 : index
    %c0_1 = arith.constant 0 : index
    %3 = vector.load %arg7[%c0, %c0_1] : memref<8x32xf32, #tpu.memory_space<vmem>>, vector<8x32xf32>
    %4 = arith.truncf %3 : vector<8x32xf32> to vector<8x32xbf16>
    %c0_2 = arith.constant 0 : index
    %c0_3 = arith.constant 0 : index
    %5 = vector.load %arg3[%c0_2, %c0_3] : memref<8x32xf32, #tpu.memory_space<vmem>>, vector<8x32xf32>
    %6 = arith.truncf %5 : vector<8x32xf32> to vector<8x32xbf16>
    %cst = arith.constant dense<0.000000e+00> : vector<8x8xf32>
    %7 = tpu.matmul %4, %6, %cst {dimension_numbers = #tpu.dot_dimension_numbers<[1], [1], [0], [0], [0, 0, 1, 0], [], []>} : vector<8x32xbf16>, vector<8x32xbf16>, vector<8x8xf32> -> vector<8x8xf32>
    %c8_i32 = arith.constant 8 : i32
    %8 = arith.muli %arg0, %c8_i32 : i32
    %9 = tpu.iota {dimensions = array<i32: 0>} : vector<8x8xi32>
    %10 = vector.broadcast %8 : i32 to vector<8x8xi32>
    %11 = arith.addi %10, %9 : vector<8x8xi32>
    %c8_i32_4 = arith.constant 8 : i32
    %12 = arith.muli %arg1, %c8_i32_4 : i32
    %13 = tpu.iota {dimensions = array<i32: 1>} : vector<8x8xi32>
    %14 = vector.broadcast %12 : i32 to vector<8x8xi32>
    %15 = arith.addi %14, %13 : vector<8x8xi32>
    %16 = arith.cmpi eq, %11, %15 : vector<8x8xi32>
    %c0_5 = arith.constant 0 : index
    %c0_6 = arith.constant 0 : index
    %17 = vector.load %arg10[%c0_5, %c0_6] : memref<8x1xf32, #tpu.memory_space<vmem>>, vector<8x1xf32>
    %cst_7 = arith.constant dense<0.000000e+00> : vector<8xf32>
    %18 = vector.multi_reduction <add>, %7, %cst_7 [1] : vector<8x8xf32> to vector<8xf32>
    %19 = vector.shape_cast %18 : vector<8xf32> to vector<8x1xf32>
    %20 = arith.addf %17, %19 : vector<8x1xf32>
    %c0_8 = arith.constant 0 : index
    %c0_9 = arith.constant 0 : index
    %21 = vector.load %arg10[%c0_8, %c0_9] : memref<8x1xf32, #tpu.memory_space<vmem>>, vector<8x1xf32>
    tpu.vector_store %arg10[%c0_8, %c0_9], %20 {strides = array<i32>} : memref<8x1xf32, #tpu.memory_space<vmem>>, vector<8x1xf32>,
    %c0_10 = arith.constant 0 : index
    %c0_11 = arith.constant 0 : index
    %22 = vector.load %arg11[%c0_10, %c0_11] : memref<8x1xf32, #tpu.memory_space<vmem>>, vector<8x1xf32>
    %cst_12 = arith.constant 0.000000e+00 : f32
    %23 = vector.broadcast %cst_12 : f32 to vector<8x8xf32>
    %24 = arith.select %16, %7, %23 : vector<8x8xi1>, vector<8x8xf32>
    %cst_13 = arith.constant dense<0.000000e+00> : vector<8xf32>
    %25 = vector.multi_reduction <add>, %24, %cst_13 [1] : vector<8x8xf32> to vector<8xf32>
    %26 = vector.shape_cast %25 : vector<8xf32> to vector<8x1xf32>
    %27 = arith.addf %22, %26 : vector<8x1xf32>
    %c0_14 = arith.constant 0 : index
    %c0_15 = arith.constant 0 : index
    %28 = vector.load %arg11[%c0_14, %c0_15] : memref<8x1xf32, #tpu.memory_space<vmem>>, vector<8x1xf32>
    tpu.vector_store %arg11[%c0_14, %c0_15], %27 {strides = array<i32>} : memref<8x1xf32, #tpu.memory_space<vmem>>, vector<8x1xf32>,
    %c0_16 = arith.constant 0 : index
    %c0_17 = arith.constant 0 : index
    %29 = vector.load %arg8[%c0_16, %c0_17] : memref<8x1xf32, #tpu.memory_space<vmem>>, vector<8x1xf32>
    %cst_18 = arith.constant dense<0xFF800000> : vector<8xf32>
    %30 = vector.multi_reduction <maximumf>, %7, %cst_18 [1] : vector<8x8xf32> to vector<8xf32>
    %31 = vector.shape_cast %30 : vector<8xf32> to vector<8x1xf32>
    %32 = arith.maximumf %29, %31 : vector<8x1xf32>
    %c0_19 = arith.constant 0 : index
    %c0_20 = arith.constant 0 : index
    %33 = vector.load %arg9[%c0_19, %c0_20] : memref<8x1xf32, #tpu.memory_space<vmem>>, vector<8x1xf32>
    %34 = arith.subf %29, %32 : vector<8x1xf32>
    %35 = math.exp %34 : vector<8x1xf32>
    %36 = arith.mulf %33, %35 : vector<8x1xf32>
    %37 = vector.broadcast %32 : vector<8x1xf32> to vector<8x8xf32>
    %38 = arith.subf %7, %37 : vector<8x8xf32>
    %39 = math.exp %38 : vector<8x8xf32>
    %cst_21 = arith.constant dense<0.000000e+00> : vector<8xf32>
    %40 = vector.multi_reduction <add>, %39, %cst_21 [1] : vector<8x8xf32> to vector<8xf32>
    %41 = vector.shape_cast %40 : vector<8xf32> to vector<8x1xf32>
    %42 = arith.addf %36, %41 : vector<8x1xf32>
    %c0_22 = arith.constant 0 : index
    %c0_23 = arith.constant 0 : index
    %43 = vector.load %arg9[%c0_22, %c0_23] : memref<8x1xf32, #tpu.memory_space<vmem>>, vector<8x1xf32>
    tpu.vector_store %arg9[%c0_22, %c0_23], %42 {strides = array<i32>} : memref<8x1xf32, #tpu.memory_space<vmem>>, vector<8x1xf32>,
    %c0_24 = arith.constant 0 : index
    %c0_25 = arith.constant 0 : index
    %44 = vector.load %arg8[%c0_24, %c0_25] : memref<8x1xf32, #tpu.memory_space<vmem>>, vector<8x1xf32>
    tpu.vector_store %arg8[%c0_24, %c0_25], %32 {strides = array<i32>} : memref<8x1xf32, #tpu.memory_space<vmem>>, vector<8x1xf32>,
    %c0_i32_26 = arith.constant 0 : i32
    %45 = arith.cmpi eq, %arg1, %c0_i32_26 : i32
    %46 = arith.extui %45 : i1 to i32
    %c0_i32_27 = arith.constant 0 : i32
    %47 = arith.cmpi ne, %46, %c0_i32_27 : i32
    scf.if %47 {
      %c0_28 = arith.constant 0 : index
      %c0_29 = arith.constant 0 : index
      %48 = vector.load %arg8[%c0_28, %c0_29] : memref<8x1xf32, #tpu.memory_space<vmem>>, vector<8x1xf32>
      %c0_30 = arith.constant 0 : index
      %c0_31 = arith.constant 0 : index
      %49 = vector.load %arg9[%c0_30, %c0_31] : memref<8x1xf32, #tpu.memory_space<vmem>>, vector<8x1xf32>
      %50 = math.log %49 : vector<8x1xf32>
      %51 = arith.addf %48, %50 : vector<8x1xf32>
      %c0_32 = arith.constant 0 : index
      %c0_33 = arith.constant 0 : index
      %52 = vector.load %arg11[%c0_32, %c0_33] : memref<8x1xf32, #tpu.memory_space<vmem>>, vector<8x1xf32>
      %53 = arith.subf %52, %51 : vector<8x1xf32>
      %c0_34 = arith.constant 0 : index
      %c0_35 = arith.constant 0 : index
      %54 = vector.load %arg10[%c0_34, %c0_35] : memref<8x1xf32, #tpu.memory_space<vmem>>, vector<8x1xf32>
      %cst_36 = arith.constant 8.000000e+00 : f32
      %55 = vector.broadcast %cst_36 : f32 to vector<8x1xf32>
      %56 = arith.mulf %55, %51 : vector<8x1xf32>
      %57 = arith.subf %54, %56 : vector<8x1xf32>
      %cst_37 = arith.constant -0.899999976 : f32
      %58 = vector.broadcast %cst_37 : f32 to vector<8x1xf32>
      %59 = arith.mulf %58, %53 : vector<8x1xf32>
      %cst_38 = arith.constant 1.250000e-02 : f32
      %60 = vector.broadcast %cst_38 : f32 to vector<8x1xf32>
      %61 = arith.mulf %60, %57 : vector<8x1xf32>
      %62 = arith.subf %59, %61 : vector<8x1xf32>
      %c0_39 = arith.constant 0 : index
      %c0_40 = arith.constant 0 : index
      %63 = vector.load %arg11[%c0_39, %c0_40] : memref<8x1xf32, #tpu.memory_space<vmem>>, vector<8x1xf32>
      %c0_41 = arith.constant 0 : index
      %c0_42 = arith.constant 0 : index
      %64 = vector.load %arg8[%c0_41, %c0_42] : memref<8x1xf32, #tpu.memory_space<vmem>>, vector<8x1xf32>
      %65 = arith.cmpf oeq, %63, %64 : vector<8x1xf32>
      %66 = arith.extui %65 : vector<8x1xi1> to vector<8x1xi32>
      %67 = arith.sitofp %66 : vector<8x1xi32> to vector<8x1xf32>
      %c0_43 = arith.constant 0 : index
      %c0_44 = arith.constant 0 : index
      %68 = vector.load %arg6[%c0_43, %c0_44] : memref<8x2xf32, #tpu.memory_space<vmem>>, vector<8x1xf32>
      tpu.vector_store %arg6[%c0_43, %c0_44], %62 {strides = array<i32>} : memref<8x2xf32, #tpu.memory_space<vmem>>, vector<8x1xf32>,
      %c0_45 = arith.constant 0 : index
      %c1 = arith.constant 1 : index
      %69 = vector.load %arg6[%c0_45, %c1] : memref<8x2xf32, #tpu.memory_space<vmem>>, vector<8x1xf32>
      tpu.vector_store %arg6[%c0_45, %c1], %67 {strides = array<i32>} : memref<8x2xf32, #tpu.memory_space<vmem>>, vector<8x1xf32>,
    } else {
    }
    return
  }
  func.func @transform_0(%arg0: i32, %arg1: i32) -> (i32, i32) {
    %c0_i32 = arith.constant 0 : i32
    %c0_i32_0 = arith.constant 0 : i32
    return %arg0, %c0_i32 : i32, i32
  }
  func.func @transform_1(%arg0: i32, %arg1: i32) -> (i32, i32) {
    %c0_i32 = arith.constant 0 : i32
    %c0_i32_0 = arith.constant 0 : i32
    return %arg1, %c0_i32 : i32, i32
  }
  func.func @transform_2(%arg0: i32, %arg1: i32) -> (i32, i32) {
    %c0_i32 = arith.constant 0 : i32
    %c0_i32_0 = arith.constant 0 : i32
    %c0_i32_1 = arith.constant 0 : i32
    return %c0_i32, %c0_i32_0 : i32, i32
  }
  func.func @transform_3(%arg0: i32, %arg1: i32) -> (i32, i32) {
    %c0_i32 = arith.constant 0 : i32
    %c0_i32_0 = arith.constant 0 : i32
    %c0_i32_1 = arith.constant 0 : i32
    return %c0_i32, %c0_i32_0 : i32, i32
  }
  func.func @transform_4(%arg0: i32, %arg1: i32) -> (i32, i32) {
    %c0_i32 = arith.constant 0 : i32
    %c0_i32_0 = arith.constant 0 : i32
    return %arg0, %c0_i32 : i32, i32
  }
}

</mosaic_0001>

<bundles_post_ra>
// kernel: pair_match_loss.1
= control target key start
LH: loop header
LB: loop body
LE: loop exit
PB: predicated region body
PF: predicated region fallthrough
CT: control target
= control target key end

     0   :  { %9 = vsyncpa [#allocation8], 0  ;;  %s481_s0 = inlined_call_operand.hbm [shape: f32[8,32], index: 0, kind: input, shape index: {}]   ;;  %s482_s1 = inlined_call_operand.hbm [shape: f32[8,32], index: 1, kind: input, shape index: {}]   ;;  %s483_s2 = inlined_call_operand.hbm [shape: f32[32,32], index: 2, kind: input, shape index: {}]   ;;  %s484_s3 = inlined_call_operand.vmem [shape: f32[1,32], index: 3, kind: input, shape index: {}]   ;;  %s485_s4 = inlined_call_operand.vmem [shape: f32[8,2], index: 4, kind: output, shape index: {}]  }
   0x1   :  { %10 = vsyncpa [#allocation10], 0  ;;  %s373_s15 = smov [#allocation9]   ;;  %s374_s17 = smov [#allocation7]  }
   0x2   :  { %s27_s16 = sshll.u32 %s373_s15, 4  ;;  %s17_s18 = sshll.u32 %s374_s17, 4  ;;  %s28_s16 = int_to_ptr.vmem [resolvable:$true] %s27_s16  ;;  %s18_s18 = int_to_ptr.vmem [resolvable:$true] %s17_s18 }
   0x3   :  { %s303_s21 = scalar_lea.hbm %s482_s1, 128 }
   0x4   :  { %p304_p0 = scmp.ne.s32.totalorder %s482_s1, %s303_s21  ;;  %p307_p1 = scmp.lt.u32.totalorder %s303_s21, %s482_s1 }
   0x6   :  { %p309_p2 = pnand %p307_p1, %p304_p0 }
   0x8   :  { %312 = shalt.err (!%p309_p2)
}
   0x9   :  { %s313_s26 = scalar_lea.vmem %s28_s16, 128  ;;  %p318_p4 = scmp.lt.s32.totalorder %s28_s16, %s28_s16 }
   0xa   :  { %p314_p3 = scmp.ne.s32.totalorder %s28_s16, %s313_s26  ;;  %p319_p5 = scmp.lt.s32.totalorder %s313_s26, %s313_s26 }
   0xc   :  { %p320_p6 = por %p319_p5, %p318_p4 }
   0xe   :  { %p321_p7 = pnand %p320_p6, %p314_p3 }
  0x10   :  { %324 = shalt.err (!%p321_p7)
}
  0x11   :  { %30 = dma.hbm_to_vmem [thread:$0]  %s482_s1, 128, %s28_s16, [#allocation10]  }
  0x12   :  { %s325_s5 = scalar_lea.hbm %s481_s0, 128 }
  0x13   :  { %p326_p8 = scmp.ne.s32.totalorder %s481_s0, %s325_s5  ;;  %p329_p9 = scmp.lt.u32.totalorder %s325_s5, %s481_s0 }
  0x15   :  { %p331_p10 = pnand %p329_p9, %p326_p8 }
  0x17   :  { %334 = shalt.err (!%p331_p10)
}
  0x18   :  { %s335_s10 = scalar_lea.vmem %s18_s18, 128  ;;  %p340_p12 = scmp.lt.s32.totalorder %s18_s18, %s18_s18 }
  0x19   :  { %p336_p11 = scmp.ne.s32.totalorder %s18_s18, %s335_s10  ;;  %p341_p13 = scmp.lt.s32.totalorder %s335_s10, %s335_s10 }
  0x1b   :  { %p342_p0 = por %p341_p13, %p340_p12 }
  0x1d   :  { %p343_p1 = pnand %p342_p0, %p336_p11 }
  0x1f   :  { %346 = shalt.err (!%p343_p1)
}
  0x20   :  { %20 = dma.hbm_to_vmem [thread:$0]  %s481_s0, 128, %s18_s18, [#allocation8]  }
  0x21   :  { %s375_s12 = smov [#allocation11]   ;;  %s347_s16 = scalar_lea.hbm %s483_s2, 512 }
  0x22   :  { %s36_s13 = sshll.u32 %s375_s12, 4  ;;  %p348_p2 = scmp.ne.s32.totalorder %s483_s2, %s347_s16  ;;  %s37_s13 = int_to_ptr.vmem [resolvable:$true] %s36_s13 }
  0x23   :  { %p351_p3 = scmp.lt.u32.totalorder %s347_s16, %s483_s2 }
  0x25   :  { %p353_p4 = pnand %p351_p3, %p348_p2 }
  0x27   :  { %356 = shalt.err (!%p353_p4)
}
  0x28   :  { %s357_s22 = scalar_lea.vmem %s37_s13, 512  ;;  %p362_p6 = scmp.lt.s32.totalorder %s37_s13, %s37_s13 }
  0x29   :  { %p358_p5 = scmp.ne.s32.totalorder %s37_s13, %s357_s22  ;;  %p363_p7 = scmp.lt.s32.totalorder %s357_s22, %s357_s22 }
  0x2b   :  { %p364_p8 = por %p363_p7, %p362_p6 }
  0x2d   :  { %p365_p9 = pnand %p364_p8, %p358_p5 }
  0x2f   :  { %368 = shalt.err (!%p365_p9)
}
  0x30   :  { %s376_s0 = smov 128   ;;  %s377_s18 = smov 8  }
  0x31   :  { %42 = dma.hbm_to_vmem [thread:$0]  %s483_s2, 512, %s37_s13, [#allocation10], %s376_s0, %s376_s0, %s377_s18  }
  0x32   :  { %369 = dma.done.wait [#allocation8], 128  }
  0x33   :  { %370 = vsyncadd [#allocation8], 4294967168 }
  0x34   :  { %371 = dma.done.wait [#allocation10], 640  }
  0x35   :  { %372 = vsyncadd [#allocation10], 4294966656  ;;  %v378_v0 = vmov 0.0   ;;  %vm379_vm0 = vmmov 0   ;;  %v61_v1 = vld [vmem:[#allocation11] sm:$0xff]  ;;  %v62_v2 = vld [vmem:[#allocation11 + $0x8] sm:$0xff]  ;;  %v182_v23 = vlaneseq }
  0x36   :  { %272 = vmatprep.subr.bf16.mxu0 %v378_v0  ;;  %276 = vmatprep.mubr.msk.bf16.mxu0 %vm379_vm0, %v378_v0  ;;  %vm74_vm1 = vcmask 261120   ;;  %v65_v3 = vpack.c.bf16 %v62_v2, %v61_v1  ;;  %v63_v4 = vld [vmem:[#allocation11 + $0x10] sm:$0xff]  ;;  %v64_v5 = vld [vmem:[#allocation11 + $0x18] sm:$0xff]  ;;  %v263_v14 = vld [vmem:[%s484_s3] ss:$0 sm:$0xff]  ;;  %vm125_vm2 = vcmask 7168  }
  0x37   :  { %280 = vmatprep.subr.bf16.mxu1 %v378_v0  ;;  %282 = vmatprep.mubr.msk.bf16.mxu1 %vm379_vm0, %v378_v0  ;;  %v66_v7 = vpack.c.bf16 %v64_v5, %v63_v4  ;;  %v59_v9 = vld [vmem:[#allocation7] sm:$0xff]  ;;  %v132_v11 = vld [vmem:[#allocation9] sm:$0xff]  ;;  %v380_v22 = vmov -inf   ;;  %127 = vst.msk [vmem:[#allocation4] sm:$0xff] %vm125_vm2, %v378_v0  ;;  %128 = vst.msk [vmem:[#allocation5] sm:$0xff] %vm125_vm2, %v378_v0  ;;  %v183_v24 = vshrl.u32 %v182_v23, 7 }
  0x38   :  { %v79_v6 = vsel %vm74_vm1, %v65_v3, 0  ;;  %v60_v10 = vpack.c.bf16 %v59_v9, %v59_v9  ;;  %v133_v12 = vpack.c.bf16 %v132_v11, %v132_v11  ;;  %126 = vst.msk [vmem:[#allocation3] sm:$0xff] %vm125_vm2, %v380_v22  ;;  %129 = vst.msk [vmem:[#allocation6] sm:$0xff] %vm125_vm2, %v378_v0  ;;  %v188_v25 = vand.u32 127, %v182_v23  ;;  %s382_s3 = smov 1  }
  0x39   :  { %273 = vmatpush3.bf16.xpose.msra.mxu0 %v79_v6  ;;  %v82_v8 = vsel %vm74_vm1, %v66_v7, 0  ;;  %vm193_vm3 = vcmask 64512   ;;  %v381_v33 = vmov 0   ;;  %vm255_vm6 = vcmask 15368  }
  0x3a   :  { %274 = vmatprep.subr.bf16.mxu0 %v378_v0  ;;  %v139_v13 = vsel %vm74_vm1, %v133_v12, 0  ;;  %vm191_vm4 = vcmp.eq.s32.totalorder %v183_v24, %v188_v25  ;;  %296 = vset.pattern.permute.xlu0 %v381_v33 }
  0x3b   :  { %281 = vmatpush3.bf16.xpose.msra.mxu1 %v139_v13 }
  0x3e   :  { %v212_v52 = vld [vmem:[#allocation4] sm:$0xff]  ;;  %v192_v56 = vld [vmem:[#allocation5] sm:$0xff] }
  0x3f   :  { %v207_v34 = vld [vmem:[#allocation3] sm:$0xff]  ;;  %v200_v35 = vld [vmem:[#allocation6] sm:$0xff] }
  0x41   :  { %275 = vmatpush3.bf16.xpose.msra.mxu0 %v82_v8 }
  0x48   :  { %277 = vmatmul.mubr.msk.bf16.vlgmr.msra.gmra.mrb[0].mxu0 %vm74_vm1, %v60_v10 }
 0x11b   :  { %v118_v15 = vpop.f32.mrb[0].mxu0 }
 0x11c   :  { %v119_v16 = vadd.f32 %v263_v14, %v118_v15  ;;  %v278_v17 = vpop.f32.mrb[1].mxu0 }
 0x11d   :  { %v121_v18 = vpop.f32.mrb[2].mxu0 }
 0x11e   :  { %124 = vst.msk [vmem:[#allocation2] sm:$0xff] %vm74_vm1, %v119_v16  ;;  %v279_v19 = vpop.f32.mrb[3].mxu0 }
 0x125   :  { %v130_v20 = vld [vmem:[#allocation2] sm:$0xff] }
 0x126   :  { %v131_v21 = vpack.c.bf16 %v130_v20, %v130_v20 }
 0x128   :  { %283 = vmatmul.mubr.msk.bf16.vlgmr.msra.gmra.mrb[0].mxu1 %vm74_vm1, %v131_v21 }
 0x1fb   :  { %v175_v26 = vpop.f32.mrb[0].mxu1 }
 0x1fc   :  { %v284_v27 = vpop.f32.mrb[1].mxu1  ;;  %v208_v28 = vsel %vm193_vm3, %v175_v26, -inf  ;;  %v201_v29 = vsel %vm191_vm4, %v175_v26, 0.0  ;;  %v194_v46 = vsel %vm193_vm3, %v175_v26, 0.0 }
 0x1fd   :  { %209 = vmax.xlane.f32.xlu0 %v208_v28  ;;  %v178_v30 = vpop.f32.mrb[2].mxu1  ;;  %v202_v31 = vsel %vm193_vm3, %v201_v29, 0.0 }
 0x1fe   :  { %203 = vadd.xlane.f32.xlu1 %v202_v31  ;;  %v285_v32 = vpop.f32.mrb[3].mxu1 }
 0x28a   :  { %v210_v36 = vpop.xlane.xlu0 %209 }
 0x28b   :  { %v211_v37 = vmax.f32 %v207_v34, %v210_v36  ;;  %v204_v38 = vpop.xlane.xlu1 %203 }
 0x28c   :  { %v205_v39 = vadd.f32 %v204_v38, %v200_v35 }
 0x28d   :  { %v213_v40 = vsub.f32 %v207_v34, %v211_v37  ;;  %230 = vst.msk [vmem:[#allocation3] sm:$0xff] %vm125_vm2, %v211_v37  ;;  %219 = vperm.xlu0 %296, %v211_v37  }
 0x28e   :  { %206 = vst.msk [vmem:[#allocation6] sm:$0xff] %vm125_vm2, %v205_v39 }
 0x28f   :  { %v214_v50 = vmul.f32 1.442695, %v213_v40 }
 0x294   :  { %v234_v47 = vld [vmem:[#allocation3] sm:$0xff] }
 0x295   :  { %v239_v48 = vld [vmem:[#allocation6] sm:$0xff] }
 0x296   :  { %vm247_vm5 = vcmp.eq.f32.partialorder %v239_v48, %v234_v47 }
 0x297   :  { %v266_v49 = vsel %vm247_vm5, 1.0, %v378_v0 }
 0x30c   :  { %v220_v41 = vpop.permute.xlu0 %219 }
 0x30d   :  { %v222_v42 = vsub.f32 %v175_v26, %v220_v41 }
 0x30f   :  { %v223_v43 = vmul.f32 1.442695, %v222_v42 }
 0x311   :  { %297 = vpow2.f32 %v223_v43 }
 0x312   :  { %299 = vpow2.f32 %v214_v50 }
 0x31b   :  { %v298_v44 = vpop.eup %297 }
 0x31c   :  { %v225_v45 = vsel %vm193_vm3, %v298_v44, 0.0  ;;  %v300_v51 = vpop.eup %299 }
 0x31d   :  { %226 = vadd.xlane.f32.xlu1 %v225_v45  ;;  %v216_v53 = vmul.f32 %v300_v51, %v212_v52 }
 0x321   :  { %195 = vadd.xlane.f32.xlu1 %v194_v46 }
 0x332   :  { %252 = vrot.lane.b32.xlu1 %v266_v49, %s382_s3 }
 0x3aa   :  { %v227_v54 = vpop.xlane.xlu1 %226 }
 0x3ab   :  { %v228_v55 = vadd.f32 %v227_v54, %v216_v53 }
 0x3ad   :  { %229 = vst.msk [vmem:[#allocation4] sm:$0xff] %vm125_vm2, %v228_v55 }
 0x3ae   :  { %v196_v57 = vpop.xlane.xlu1 %195 }
 0x3af   :  { %v197_v58 = vadd.f32 %v196_v57, %v192_v56 }
 0x3b1   :  { %199 = vst.msk [vmem:[#allocation5] sm:$0xff] %vm125_vm2, %v197_v58 }
 0x3b2   :  { %v253_v6 = vpop.permute.xlu1 %252 }
 0x3b4   :  { %v235_v59 = vld [vmem:[#allocation4] sm:$0xff] }
 0x3b5   :  { %301 = vlog2.f32 %v235_v59 }
 0x3b8   :  { %v241_v1 = vld [vmem:[#allocation5] sm:$0xff] }
 0x3bf   :  { %v302_v60 = vpop.eup %301 }
 0x3c0   :  { %v237_v61 = vmul.f32 0.6931472, %v302_v60 }
 0x3c2   :  { %v238_v62 = vadd.f32 %v237_v61, %v234_v47 }
 0x3c4   :  { %v240_v63 = vsub.f32 %v239_v48, %v238_v62  ;;  %v242_v0 = vmul.f32 8.0, %v238_v62 }
 0x3c6   :  { %v243_v2 = vsub.f32 %v241_v1, %v242_v0  ;;  %v244_v3 = vmul.f32 -0.9, %v240_v63 }
 0x3c8   :  { %v245_v4 = vmul.f32 0.0125, %v243_v2 }
 0x3ca   :  { %v246_v5 = vsub.f32 %v244_v3, %v245_v4 }
 0x3cc   :  { %250 = vst.msk [vmem:[%s485_s4] sm:$0xff] %vm125_vm2, %v246_v5 }
 0x3cd   :  { %256 = vst.msk [vmem:[%s485_s4] sm:$0xff] %vm255_vm6, %v253_v6 }
 0x3ce   :  { %261 = vsyncpa [#allocation8], 1 }
 0x3cf   :  { %262 = vsyncpa [#allocation10], 1 }

</bundles_post_ra>
